<compile_context>
chip_gen: v5e
topology: v5e:2x2
jax: 0.10.0
libtpu: 0.0.40
codegen_flags: <defaults>
</compile_context>

<pallas_src>
import functools

import jax
import jax.numpy as jnp
from jax import lax
from jax.experimental import pallas as pl
from jax.experimental.pallas import tpu as pltpu


_VMEM_LIMIT = 48 * 1024 * 1024  # fits v7x's 64 MiB physical VMEM with headroom


def _round_up(x, m):
    return (x + m - 1) // m * m


# ----------------------------------------------------------------------------
# Kernel 1: tiled matmul (bf16 in, f32 accumulate)
# ----------------------------------------------------------------------------

def _matmul_kernel(x_ref, w_ref, o_ref, acc_ref):
    @pl.when(pl.program_id(2) == 0)
    def _():
        acc_ref[...] = jnp.zeros_like(acc_ref)

    acc_ref[...] += jnp.dot(x_ref[...], w_ref[...],
                            preferred_element_type=jnp.float32)

    @pl.when(pl.program_id(2) == pl.num_programs(2) - 1)
    def _():
        o_ref[...] = acc_ref[...].astype(o_ref.dtype)


def linear(x, w_t):
    """x @ w_t, with w_t already stored as (in, out) bf16."""
    lead = x.shape[:-1]
    K = x.shape[-1]
    N = w_t.shape[1]
    x2 = x.reshape(-1, K).astype(jnp.bfloat16)
    w2 = w_t.astype(jnp.bfloat16)
    M = x2.shape[0]

    tm = min(512, _round_up(M, 8))
    tn = min(512, _round_up(N, 128))
    tk = min(512, _round_up(K, 128))
    Mp, Np, Kp = _round_up(M, tm), _round_up(N, tn), _round_up(K, tk)
    if (Mp, Kp) != (M, K):
        x2 = jnp.pad(x2, ((0, Mp - M), (0, Kp - K)))
    if (Kp, Np) != (K, N):
        w2 = jnp.pad(w2, ((0, Kp - K), (0, Np - N)))

    out = pl.pallas_call(
        _matmul_kernel,
        out_shape=jax.ShapeDtypeStruct((Mp, Np), jnp.float32),
        grid=(Mp // tm, Np // tn, Kp // tk),
        in_specs=[pl.BlockSpec((tm, tk), lambda i, j, k: (i, k)),
                  pl.BlockSpec((tk, tn), lambda i, j, k: (k, j))],
        out_specs=pl.BlockSpec((tm, tn), lambda i, j, k: (i, j)),
        scratch_shapes=[pltpu.VMEM((tm, tn), jnp.float32)],
        compiler_params=pltpu.CompilerParams(
            dimension_semantics=("parallel", "parallel", "arbitrary"),
            vmem_limit_bytes=_VMEM_LIMIT),
    )(x2, w2)
    return out[:M, :N].reshape(*lead, N)


# ----------------------------------------------------------------------------
# Kernel 2: fused  rmsnorm(y * silu(z)) @ out_proj
# ----------------------------------------------------------------------------

def _gated_out_proj_kernel(z_ref, y_ref, nw_ref, w_ref, o_ref, g_ref, *, eps):
    # Gate + norm computed once per row tile (j == 0), reused for all N tiles.
    @pl.when(pl.program_id(1) == 0)
    def _():
        z = z_ref[...].astype(jnp.float32)
        y = y_ref[...].astype(jnp.float32)
        g = y * (z * jax.nn.sigmoid(z))                      # y * silu(z)
        var = jnp.mean(g * g, axis=-1, keepdims=True)
        g = g * lax.rsqrt(var + eps) * nw_ref[...].astype(jnp.float32)
        g_ref[...] = g.astype(g_ref.dtype)

    o_ref[...] = jnp.dot(g_ref[...], w_ref[...],
                         preferred_element_type=jnp.float32)


def gated_norm_linear(z, y, norm_w, w_t, eps=1e-5):
    lead = z.shape[:-1]
    hid = z.shape[-1]
    N = w_t.shape[1]
    z2 = z.reshape(-1, hid).astype(jnp.float32)
    y2 = y.reshape(-1, hid).astype(jnp.float32)
    M = z2.shape[0]

    tm = min(256, _round_up(M, 8))
    tn = min(256, _round_up(N, 128))
    Mp, Np = _round_up(M, tm), _round_up(N, tn)
    if Mp != M:
        z2 = jnp.pad(z2, ((0, Mp - M), (0, 0)))
        y2 = jnp.pad(y2, ((0, Mp - M), (0, 0)))
    w2 = w_t.astype(jnp.bfloat16)
    if Np != N:
        w2 = jnp.pad(w2, ((0, 0), (0, Np - N)))
    nw2 = norm_w.reshape(1, hid).astype(jnp.float32)

    out = pl.pallas_call(
        functools.partial(_gated_out_proj_kernel, eps=eps),
        out_shape=jax.ShapeDtypeStruct((Mp, Np), jnp.float32),
        grid=(Mp // tm, Np // tn),
        in_specs=[pl.BlockSpec((tm, hid), lambda i, j: (i, 0)),
                  pl.BlockSpec((tm, hid), lambda i, j: (i, 0)),
                  pl.BlockSpec((1, hid), lambda i, j: (0, 0)),
                  pl.BlockSpec((hid, tn), lambda i, j: (0, j))],
        out_specs=pl.BlockSpec((tm, tn), lambda i, j: (i, j)),
        scratch_shapes=[pltpu.VMEM((tm, hid), jnp.bfloat16)],
        compiler_params=pltpu.CompilerParams(
            dimension_semantics=("parallel", "arbitrary"),
            vmem_limit_bytes=_VMEM_LIMIT),
    )(z2, y2, nw2, w2)
    return out[:M, :N].reshape(*lead, N)


# ----------------------------------------------------------------------------
# Kernel 3: chunked SSD scan (intra-chunk on the MXU, inter-chunk state carry)
# ----------------------------------------------------------------------------

def _ssd_chunk_kernel(x_ref, dt_ref, dtb_ref, A_ref, B_ref, C_ref, D_ref,
                      o_ref, state_ref):
    H, L, P = x_ref.shape[1], x_ref.shape[2], x_ref.shape[3]
    G, N = B_ref.shape[1], B_ref.shape[3]

    @pl.when(pl.program_id(1) == 0)
    def _():
        state_ref[...] = jnp.zeros_like(state_ref)

    x_h = x_ref[0].astype(jnp.float32)                      # (H, L, P)
    dt_h = dt_ref[0].astype(jnp.float32).T                  # (H, L)
    A = A_ref[0].astype(jnp.float32)                        # (H,)
    dtb = dtb_ref[0].astype(jnp.float32)                    # (H,)
    Dsk = D_ref[0].astype(jnp.float32)                      # (H,)

    Bg = B_ref[0].astype(jnp.float32)                       # (G, L, N)
    Cg = C_ref[0].astype(jnp.float32)                       # (G, L, N)

    dt_sp = jax.nn.softplus(dt_h + dtb[:, None])            # (H, L)
    dA = dt_sp * A[:, None]                                 # (H, L)

    ii = lax.broadcasted_iota(jnp.int32, (L, L), 0)         # row (dest step i)
    jj = lax.broadcasted_iota(jnp.int32, (L, L), 1)         # col (src step j)
    tri = (jj <= ii).astype(jnp.float32)                    # inclusive cumsum
    cum = jnp.einsum('hk,ik->hi', dA, tri,
                     preferred_element_type=jnp.float32)    # (H, L)

    # scores[i,j] = C_i . B_j computed once per GROUP (single batched matmul),
    # then broadcast to heads -- heads in the same group share B/C exactly.
    scores_g = jnp.einsum('gin,gjn->gij', Cg, Bg,
                          preferred_element_type=jnp.float32)   # (G, L, L)
    if G == 1:
        scores = jnp.broadcast_to(scores_g, (H, L, L))
        B_h = jnp.broadcast_to(Bg, (H, L, N))
        C_h = jnp.broadcast_to(Cg, (H, L, N))
    else:
        rep = H // G
        scores = jnp.repeat(scores_g, rep, axis=0)
        B_h = jnp.repeat(Bg, rep, axis=0)
        C_h = jnp.repeat(Cg, rep, axis=0)

    # intra-chunk:  y[i] += sum_{j<=i} (C_i.B_j) exp(cum_i-cum_j) dt_j x_j
    diff = cum[:, :, None] - cum[:, None, :]
    decay = jnp.exp(jnp.where((ii >= jj)[None], diff, -1e30))
    W = scores * decay * dt_sp[:, None, :]
    y_h = jnp.einsum('hij,hjp->hip', W, x_h,
                     preferred_element_type=jnp.float32)                # (H,L,P)

    # inter-chunk contribution from the carried state
    state = state_ref[...]                                               # (H,P,N)
    y_inter = jnp.einsum('hin,hpn->hip', C_h, state,
                         preferred_element_type=jnp.float32)
    y_h = y_h + y_inter * jnp.exp(cum)[:, :, None]

    # D skip connection
    y_h = y_h + Dsk[:, None, None] * x_h

    # carry the state to the next chunk
    w_end = jnp.exp(cum[:, L - 1:L] - cum) * dt_sp                       # (H, L)
    upd = jnp.einsum('hlp,hln->hpn', x_h * w_end[:, :, None], B_h,
                     preferred_element_type=jnp.float32)                 # (H,P,N)
    state_ref[...] = jnp.exp(cum[:, L - 1])[:, None, None] * state + upd

    o_ref[0] = y_h.astype(o_ref.dtype)


def ssd_scan(xs, dt, dt_bias, A, Bm, Cm, D, chunk_size):
    """xs:(B,S,H,P), dt:(B,S,H), Bm/Cm:(B,S,G,N), A/D/dt_bias:(H,) -> (B,S,H,P)."""
    Bp, S, H, P = xs.shape
    G, N = Bm.shape[2], Bm.shape[3]
    L = S if S <= chunk_size else chunk_size
    assert L == S or L % 8 == 0, "chunk_size must be a multiple of 8"
    Sp = _round_up(S, L)
    if Sp != S:
        pad = Sp - S
        xs = jnp.pad(xs, ((0, 0), (0, pad), (0, 0), (0, 0)))
        dt = jnp.pad(dt, ((0, 0), (0, pad), (0, 0)))
        Bm = jnp.pad(Bm, ((0, 0), (0, pad), (0, 0), (0, 0)))
        Cm = jnp.pad(Cm, ((0, 0), (0, pad), (0, 0), (0, 0)))

    xs_h = xs.transpose(0, 2, 1, 3).astype(jnp.float32)     # (B, H, Sp, P)
    Bm_g = Bm.transpose(0, 2, 1, 3).astype(jnp.float32)     # (B, G, Sp, N)
    Cm_g = Cm.transpose(0, 2, 1, 3).astype(jnp.float32)
    dt_f = dt.astype(jnp.float32)                            # (B, Sp, H)
    A2 = A.reshape(1, H).astype(jnp.float32)
    D2 = D.reshape(1, H).astype(jnp.float32)
    dtb2 = dt_bias.reshape(1, H).astype(jnp.float32)
    nchunks = Sp // L

    y = pl.pallas_call(
        _ssd_chunk_kernel,
        out_shape=jax.ShapeDtypeStruct((Bp, H, Sp, P), jnp.float32),
        grid=(Bp, nchunks),
        in_specs=[
            pl.BlockSpec((1, H, L, P), lambda b, c: (b, 0, c, 0)),
            pl.BlockSpec((1, L, H), lambda b, c: (b, c, 0)),
            pl.BlockSpec((1, H), lambda b, c: (0, 0)),
            pl.BlockSpec((1, H), lambda b, c: (0, 0)),
            pl.BlockSpec((1, G, L, N), lambda b, c: (b, 0, c, 0)),
            pl.BlockSpec((1, G, L, N), lambda b, c: (b, 0, c, 0)),
            pl.BlockSpec((1, H), lambda b, c: (0, 0)),
        ],
        out_specs=pl.BlockSpec((1, H, L, P), lambda b, c: (b, 0, c, 0)),
        scratch_shapes=[pltpu.VMEM((H, P, N), jnp.float32)],
        compiler_params=pltpu.CompilerParams(
            dimension_semantics=("parallel", "arbitrary"),
            vmem_limit_bytes=_VMEM_LIMIT),
    )(xs_h, dt_f, dtb2, A2, Bm_g, Cm_g, D2)
    return y[:, :, :S, :].transpose(0, 2, 1, 3)              # (B, S, H, P)


# ----------------------------------------------------------------------------
# SSM.forward (conv_size=None, ssm_impl='ssm', no cache)
# ----------------------------------------------------------------------------

def ssm_forward(x, p, cfg):
    Bp, S, _ = x.shape
    hid = cfg["ssm_hidden"]
    H = cfg["ssm_heads"]
    G = cfg["n_groups"]
    N = cfg["state_dim"]
    P = hid // H

    zxbcdt = linear(x, p["in_proj_t"])                       # (B, S, d_in_proj)
    z = zxbcdt[..., :hid]
    xs = zxbcdt[..., hid:2 * hid].reshape(Bp, S, H, P)
    Bm = zxbcdt[..., 2 * hid:2 * hid + G * N].reshape(Bp, S, G, N)
    Cm = zxbcdt[..., 2 * hid + G * N:2 * hid + 2 * G * N].reshape(Bp, S, G, N)
    dt = zxbcdt[..., 2 * hid + 2 * G * N:]

    A = -jnp.exp(p["A_log"].astype(jnp.float32))
    y = ssd_scan(xs, dt, p["dt_bias"], A, Bm, Cm, p["D"], cfg["chunk_size"])
    y = y.reshape(Bp, S, hid)

    # fused: out_proj(ssm_norm(y * silu(z)))
    return gated_norm_linear(z, y, p["ssm_norm"], p["out_proj_t"], eps=1e-5)


# ----------------------------------------------------------------------------
# Pure-JAX reference (per-timestep scan) for a correctness check
# ----------------------------------------------------------------------------

def ref_ssm_forward(x, p, cfg):
    hid = cfg["ssm_hidden"]
    H = cfg["ssm_heads"]
    G = cfg["n_groups"]
    N = cfg["state_dim"]
    P = hid // H
    Bsz, S, _ = x.shape

    zxbcdt = jnp.dot(x.astype(jnp.bfloat16), p["in_proj_t"],
                     preferred_element_type=jnp.float32)
    z = zxbcdt[..., :hid]
    xs = zxbcdt[..., hid:2 * hid].reshape(Bsz, S, H, P)
    Bm = zxbcdt[..., 2 * hid:2 * hid + G * N].reshape(Bsz, S, G, N)
    Cm = zxbcdt[..., 2 * hid + G * N:2 * hid + 2 * G * N].reshape(Bsz, S, G, N)
    dt = zxbcdt[..., 2 * hid + 2 * G * N:]

    A = -jnp.exp(p["A_log"].astype(jnp.float32))
    dt_sp = jax.nn.softplus(dt + p["dt_bias"][None, None, :])
    Bh = jnp.repeat(Bm, H // G, axis=2)
    Ch = jnp.repeat(Cm, H // G, axis=2)

    def step(state, inp):
        x_t, dtp_t, B_t, C_t = inp
        decay = jnp.exp(dtp_t * A[None, :])
        state = (decay[..., None, None] * state
                 + (dtp_t[..., None] * x_t)[..., None] * B_t[:, :, None, :])
        y = jnp.sum(state * C_t[:, :, None, :], axis=-1) \
            + p["D"][None, :, None] * x_t
        return state, y

    state0 = jnp.zeros((Bsz, H, P, N), jnp.float32)
    _, ys = lax.scan(step, state0,
                     (xs.transpose(1, 0, 2, 3), dt_sp.transpose(1, 0, 2),
                      Bh.transpose(1, 0, 2, 3), Ch.transpose(1, 0, 2, 3)))
    y = ys.transpose(1, 0, 2, 3).reshape(Bsz, S, hid)

    g = y * jax.nn.silu(z)
    var = jnp.mean(g * g, axis=-1, keepdims=True)
    g = g * lax.rsqrt(var + 1e-5) * p["ssm_norm"][None, None, :]
    return jnp.dot(g.astype(jnp.bfloat16), p["out_proj_t"],
                   preferred_element_type=jnp.float32)


# ----------------------------------------------------------------------------
# Parameter construction (shapes follow SSM.__init__ / reset_parameters)
# ----------------------------------------------------------------------------

def _round_hidden(hidden, multiple_of, ffn_mult=None):
    hidden = int(2 * hidden / 3)
    if ffn_mult is not None:
        hidden = int(ffn_mult * hidden)
    return multiple_of * ((hidden + multiple_of - 1) // multiple_of)


def make_ssm_params(key, dim_in, odim, ssm_hidden, ssm_heads, state_dim,
                    n_groups):
    k1, k2 = jax.random.split(key)
    d_in_proj = 2 * ssm_hidden + 2 * n_groups * state_dim + ssm_heads
    in_std = dim_in ** -0.5
    out_std = ssm_hidden ** -0.5
    in_proj = jax.random.normal(k1, (d_in_proj, dim_in), jnp.float32) * in_std
    out_proj = jax.random.normal(k2, (odim, ssm_hidden), jnp.float32) * out_std
    return dict(
        # pre-transposed to (in, out) and pre-cast to bf16 once
        in_proj_t=in_proj.T.astype(jnp.bfloat16),
        out_proj_t=out_proj.T.astype(jnp.bfloat16),
        A_log=jnp.log(jnp.linspace(1.0, 16.0, ssm_heads, dtype=jnp.float32)),
        D=jnp.ones((ssm_heads,), jnp.float32),               # D_has_head_dim=False
        dt_bias=jnp.zeros((ssm_heads,), jnp.float32),        # module dt_bias=False
        ssm_norm=jnp.ones((ssm_hidden,), jnp.float32),
    )


# ----------------------------------------------------------------------------
# Main
# ----------------------------------------------------------------------------

if __name__ == "__main__":
    dim = 64
    odim = 64
    hidden_dim_arg = 96
    multiple_of = 32
    ssm_heads = 4
    state_dim = 16
    n_groups = 1
    chunk_size = 8            # small so the test exercises inter-chunk state carry

    ssm_hidden = _round_hidden(hidden_dim_arg, multiple_of)  # 64, head_dim 16
    cfg = dict(dim=dim, odim=odim, ssm_hidden=ssm_hidden, ssm_heads=ssm_heads,
               state_dim=state_dim, n_groups=n_groups, chunk_size=chunk_size)

    key = jax.random.PRNGKey(0)
    pkey, xkey = jax.random.split(key)
    params = make_ssm_params(pkey, dim, odim, ssm_hidden, ssm_heads,
                             state_dim, n_groups)

    B, S = 2, 32
    x = jax.random.normal(xkey, (B, S, dim), jnp.float32)

    out = ssm_forward(x, params, cfg)
    out = jax.block_until_ready(out)
    assert out.shape == (B, S, odim), out.shape
    assert bool(jnp.all(jnp.isfinite(out)))

    ref = ref_ssm_forward(x, params, cfg)
    ref = jax.block_until_ready(ref)
    assert bool(jnp.allclose(out, ref, rtol=3e-2, atol=3e-2)), (
        float(jnp.max(jnp.abs(out - ref))))

    print("KERNEL_OK")
</pallas_src>

<mosaic_0001>
module attributes {stable_mosaic.version = 11 : i64} {
  func.func @_matmul_kernel(%arg0: i32, %arg1: i32, %arg2: i32, %arg3: memref<64x128xbf16, #tpu.memory_space<vmem>>, %arg4: memref<128x256xbf16, #tpu.memory_space<vmem>>, %arg5: memref<64x256xf32, #tpu.memory_space<vmem>>, %arg6: memref<64x256xf32, #tpu.memory_space<vmem>>) attributes {dimension_semantics = [#tpu.dimension_semantics<parallel>, #tpu.dimension_semantics<parallel>, #tpu.dimension_semantics<arbitrary>], iteration_bounds = array<i64: 1, 1, 1>, scalar_prefetch = 0 : i64, scratch_operands = 1 : i64, tpu.core_type = #tpu.core_type<tc>, window_params = [{transform_indices = @transform_0, window_bounds = array<i64: 64, 128>}, {transform_indices = @transform_1, window_bounds = array<i64: 128, 256>}, {transform_indices = @transform_2, window_bounds = array<i64: 64, 256>}]} {
    %c0_i32 = arith.constant 0 : i32
    %0 = arith.cmpi eq, %arg2, %c0_i32 : i32
    %1 = arith.extui %0 : i1 to i32
    %c0_i32_0 = arith.constant 0 : i32
    %2 = arith.cmpi ne, %1, %c0_i32_0 : i32
    scf.if %2 {
      %cst_10 = arith.constant 0.000000e+00 : f32
      %12 = vector.broadcast %cst_10 : f32 to vector<64x256xf32>
      %c0_11 = arith.constant 0 : index
      %c0_12 = arith.constant 0 : index
      %13 = vector.load %arg6[%c0_11, %c0_12] : memref<64x256xf32, #tpu.memory_space<vmem>>, vector<64x256xf32>
      tpu.vector_store %arg6[%c0_11, %c0_12], %12 {strides = array<i32>} : memref<64x256xf32, #tpu.memory_space<vmem>>, vector<64x256xf32>,
    } else {
    }
    %c0 = arith.constant 0 : index
    %c0_1 = arith.constant 0 : index
    %3 = vector.load %arg6[%c0, %c0_1] : memref<64x256xf32, #tpu.memory_space<vmem>>, vector<64x256xf32>
    %c0_2 = arith.constant 0 : index
    %c0_3 = arith.constant 0 : index
    %4 = vector.load %arg3[%c0_2, %c0_3] : memref<64x128xbf16, #tpu.memory_space<vmem>>, vector<64x128xbf16>
    %c0_4 = arith.constant 0 : index
    %c0_5 = arith.constant 0 : index
    %5 = vector.load %arg4[%c0_4, %c0_5] : memref<128x256xbf16, #tpu.memory_space<vmem>>, vector<128x256xbf16>
    %cst = arith.constant dense<0.000000e+00> : vector<64x256xf32>
    %6 = tpu.matmul %4, %5, %cst {dimension_numbers = #tpu.dot_dimension_numbers<[1], [0], [0], [1], [0, 0, 1, 1], [], []>} : vector<64x128xbf16>, vector<128x256xbf16>, vector<64x256xf32> -> vector<64x256xf32>
    %7 = arith.addf %3, %6 : vector<64x256xf32>
    %c0_6 = arith.constant 0 : index
    %c0_7 = arith.constant 0 : index
    %8 = vector.load %arg6[%c0_6, %c0_7] : memref<64x256xf32, #tpu.memory_space<vmem>>, vector<64x256xf32>
    tpu.vector_store %arg6[%c0_6, %c0_7], %7 {strides = array<i32>} : memref<64x256xf32, #tpu.memory_space<vmem>>, vector<64x256xf32>,
    %c0_i32_8 = arith.constant 0 : i32
    %9 = arith.cmpi eq, %arg2, %c0_i32_8 : i32
    %10 = arith.extui %9 : i1 to i32
    %c0_i32_9 = arith.constant 0 : i32
    %11 = arith.cmpi ne, %10, %c0_i32_9 : i32
    scf.if %11 {
      %c0_10 = arith.constant 0 : index
      %c0_11 = arith.constant 0 : index
      %12 = vector.load %arg6[%c0_10, %c0_11] : memref<64x256xf32, #tpu.memory_space<vmem>>, vector<64x256xf32>
      %c0_12 = arith.constant 0 : index
      %c0_13 = arith.constant 0 : index
      %13 = vector.load %arg5[%c0_12, %c0_13] : memref<64x256xf32, #tpu.memory_space<vmem>>, vector<64x256xf32>
      tpu.vector_store %arg5[%c0_12, %c0_13], %12 {strides = array<i32>} : memref<64x256xf32, #tpu.memory_space<vmem>>, vector<64x256xf32>,
    } else {
    }
    return
  }
  func.func @transform_0(%arg0: i32, %arg1: i32, %arg2: i32) -> (i32, i32) {
    %c0_i32 = arith.constant 0 : i32
    return %arg0, %arg2 : i32, i32
  }
  func.func @transform_1(%arg0: i32, %arg1: i32, %arg2: i32) -> (i32, i32) {
    %c0_i32 = arith.constant 0 : i32
    return %arg2, %arg1 : i32, i32
  }
  func.func @transform_2(%arg0: i32, %arg1: i32, %arg2: i32) -> (i32, i32) {
    %c0_i32 = arith.constant 0 : i32
    return %arg0, %arg1 : i32, i32
  }
}

</mosaic_0001>

<bundles_post_ra>
// kernel: tpu_custom_call.1
= control target key start
LH: loop header
LB: loop body
LE: loop exit
PB: predicated region body
PF: predicated region fallthrough
CT: control target
= control target key end

     0   :  { %7 = vsyncpa [#allocation4], 0  ;;  %s589_s0 = inlined_call_operand.hbm [shape: bf16[64,128], index: 0, kind: input, shape index: {}]   ;;  %s590_s1 = inlined_call_operand.hbm [shape: bf16[128,256], index: 1, kind: input, shape index: {}]   ;;  %s591_s2 = inlined_call_operand.hbm [shape: f32[64,256], index: 2, kind: output, shape index: {}]  }
   0x1   :  { %8 = vsyncpa [#allocation7], 0 }
   0x2   :  { %9 = vsyncpa [#allocation5], 0  ;;  %s14_s11 = sshll.u32 %s589_s0, 4  ;;  %s556_s12 = smov [#allocation3]   ;;  %s15_s11 = int_to_ptr.hbm [resolvable:$true] %s14_s11 }
   0x3   :  { %s16_s13 = sshll.u32 %s556_s12, 4  ;;  %s27_s16 = sshll.u32 %s590_s1, 4  ;;  %s17_s13 = int_to_ptr.vmem [resolvable:$true] %s16_s13  ;;  %s28_s16 = int_to_ptr.hbm [resolvable:$true] %s27_s16 }
   0x4   :  { %s557_s17 = smov 64   ;;  %s558_s18 = smov 4  }
   0x5   :  { %22 = dma.hbm_to_vmem [thread:$0]  %s15_s11, 512, %s17_s13, [#allocation4], %s557_s17, %s557_s17, %s558_s18  }
   0x6   :  { %s559_s19 = smov [#allocation6]   ;;  %s560_s21 = smov 128  }
   0x7   :  { %s29_s20 = sshll.u32 %s559_s19, 4  ;;  %s561_s22 = smov 8   ;;  %s30_s20 = int_to_ptr.vmem [resolvable:$true] %s29_s20 }
   0x8   :  { %35 = dma.hbm_to_vmem [thread:$0]  %s28_s16, 2048, %s30_s20, [#allocation7], %s560_s21, %s560_s21, %s561_s22  }
   0x9   :  { %550 = dma.done.wait [#allocation4], 512  }
   0xa   :  { %551 = vsyncadd [#allocation4], 4294966784 }
   0xb   :  { %552 = dma.done.wait [#allocation7], 2048  }
   0xc   :  { %553 = vsyncadd [#allocation7], 4294965248  ;;  %v427_v0 = vld [vmem:[#allocation6 + $0x70] sm:$0xf]  ;;  %v452_v1 = vld [vmem:[#allocation6 + $0x74] sm:$0xf0] }
   0xd   :  { %v451_v2 = vld [vmem:[#allocation6 + $0x74] sm:$0xf]  ;;  %v428_v3 = vor.u32 %v452_v1, %v427_v0  ;;  %v429_v4 = vld [vmem:[#allocation6 + $0x78] sm:$0xf0]  ;;  %v419_v5 = vld [vmem:[#allocation6 + $0x60] sm:$0xf] }
   0xe   :  { %v450_v6 = vld [vmem:[#allocation6 + $0x64] sm:$0xf0]  ;;  %v432_v7 = vor.u32 %v451_v2, %v429_v4  ;;  %v449_v8 = vld [vmem:[#allocation6 + $0x64] sm:$0xf]  ;;  %v421_v9 = vld [vmem:[#allocation6 + $0x68] sm:$0xf0] }
   0xf   :  { %208 = vmatpush.bf16.msra.mxu0 %v428_v3  ;;  %453 = vmatpush.bf16.msra.mxu2 %v428_v3  ;;  %v420_v10 = vor.u32 %v450_v6, %v419_v5  ;;  %v424_v11 = vor.u32 %v449_v8, %v421_v9  ;;  %v411_v12 = vld [vmem:[#allocation6 + $0x50] sm:$0xf]  ;;  %v448_v13 = vld [vmem:[#allocation6 + $0x54] sm:$0xf0]  ;;  %v447_v14 = vld [vmem:[#allocation6 + $0x54] sm:$0xf] }
  0x10   :  { %237 = vmatpush.bf16.msra.mxu1 %v432_v7  ;;  %461 = vmatpush.bf16.msra.mxu3 %v432_v7  ;;  %v413_v15 = vld [vmem:[#allocation6 + $0x58] sm:$0xf0]  ;;  %v412_v16 = vor.u32 %v448_v13, %v411_v12  ;;  %v403_v18 = vld [vmem:[#allocation6 + $0x40] sm:$0xf]  ;;  %v446_v19 = vld [vmem:[#allocation6 + $0x44] sm:$0xf0] }
  0x11   :  { %v416_v17 = vor.u32 %v447_v14, %v413_v15  ;;  %v445_v20 = vld [vmem:[#allocation6 + $0x44] sm:$0xf]  ;;  %v405_v21 = vld [vmem:[#allocation6 + $0x48] sm:$0xf0]  ;;  %v404_v22 = vor.u32 %v446_v19, %v403_v18  ;;  %v395_v24 = vld [vmem:[#allocation6 + $0x30] sm:$0xf] }
  0x12   :  { %v408_v23 = vor.u32 %v445_v20, %v405_v21  ;;  %v444_v25 = vld [vmem:[#allocation6 + $0x34] sm:$0xf0]  ;;  %v443_v26 = vld [vmem:[#allocation6 + $0x34] sm:$0xf]  ;;  %v397_v27 = vld [vmem:[#allocation6 + $0x38] sm:$0xf0] }
  0x13   :  { %209 = vmatpush.bf16.msra.mxu0 %v420_v10  ;;  %454 = vmatpush.bf16.msra.mxu2 %v420_v10  ;;  %v396_v28 = vor.u32 %v444_v25, %v395_v24  ;;  %v400_v29 = vor.u32 %v443_v26, %v397_v27  ;;  %v387_v30 = vld [vmem:[#allocation6 + $0x20] sm:$0xf]  ;;  %v442_v31 = vld [vmem:[#allocation6 + $0x24] sm:$0xf0]  ;;  %v441_v32 = vld [vmem:[#allocation6 + $0x24] sm:$0xf] }
  0x14   :  { %238 = vmatpush.bf16.msra.mxu1 %v424_v11  ;;  %462 = vmatpush.bf16.msra.mxu3 %v424_v11  ;;  %v389_v33 = vld [vmem:[#allocation6 + $0x28] sm:$0xf0]  ;;  %v388_v34 = vor.u32 %v442_v31, %v387_v30  ;;  %v379_v36 = vld [vmem:[#allocation6 + $0x10] sm:$0xf]  ;;  %v440_v37 = vld [vmem:[#allocation6 + $0x14] sm:$0xf0] }
  0x15   :  { %v392_v35 = vor.u32 %v441_v32, %v389_v33  ;;  %v439_v38 = vld [vmem:[#allocation6 + $0x14] sm:$0xf]  ;;  %v381_v39 = vld [vmem:[#allocation6 + $0x18] sm:$0xf0]  ;;  %v380_v40 = vor.u32 %v440_v37, %v379_v36  ;;  %v371_v42 = vld [vmem:[#allocation6] sm:$0xf] }
  0x16   :  { %v384_v41 = vor.u32 %v439_v38, %v381_v39  ;;  %v438_v43 = vld [vmem:[#allocation6 + $0x4] sm:$0xf0]  ;;  %v437_v44 = vld [vmem:[#allocation6 + $0x4] sm:$0xf]  ;;  %v373_v45 = vld [vmem:[#allocation6 + $0x8] sm:$0xf0] }
  0x17   :  { %210 = vmatpush.bf16.msra.mxu0 %v412_v16  ;;  %455 = vmatpush.bf16.msra.mxu2 %v412_v16  ;;  %v372_v46 = vor.u32 %v438_v43, %v371_v42  ;;  %v376_v47 = vor.u32 %v437_v44, %v373_v45  ;;  %v433_v48 = vld [vmem:[#allocation3] sm:$0xff]  ;;  %v435_v49 = vld [vmem:[#allocation3 + $0x10] sm:$0xff]  ;;  %v434_v50 = vld [vmem:[#allocation3 + $0x8] sm:$0xff]  ;;  %s562_s0 = smov [#allocation8]   ;;  %s339_s25 = sshll.u32 %s591_s2, 4  ;;  %s340_s25 = int_to_ptr.hbm [resolvable:$true] %s339_s25 }
  0x18   :  { %239 = vmatpush.bf16.msra.mxu1 %v416_v17  ;;  %463 = vmatpush.bf16.msra.mxu3 %v416_v17  ;;  %v436_v51 = vld [vmem:[#allocation3 + $0x18] sm:$0xff]  ;;  %s337_s1 = sshll.u32 %s562_s0, 4  ;;  %s563_s26 = smov 256   ;;  %s338_s1 = int_to_ptr.vmem [resolvable:$true] %s337_s1 }
  0x19   :  { %s564_s27 = smov 16  }
  0x1b   :  { %211 = vmatpush.bf16.msra.mxu0 %v404_v22  ;;  %456 = vmatpush.bf16.msra.mxu2 %v404_v22 }
  0x1c   :  { %240 = vmatpush.bf16.msra.mxu1 %v408_v23  ;;  %464 = vmatpush.bf16.msra.mxu3 %v408_v23 }
  0x1f   :  { %212 = vmatpush.bf16.msra.mxu0 %v396_v28  ;;  %457 = vmatpush.bf16.msra.mxu2 %v396_v28 }
  0x20   :  { %241 = vmatpush.bf16.msra.mxu1 %v400_v29  ;;  %465 = vmatpush.bf16.msra.mxu3 %v400_v29 }
  0x23   :  { %213 = vmatpush.bf16.msra.mxu0 %v388_v34  ;;  %458 = vmatpush.bf16.msra.mxu2 %v388_v34 }
  0x24   :  { %242 = vmatpush.bf16.msra.mxu1 %v392_v35  ;;  %466 = vmatpush.bf16.msra.mxu3 %v392_v35 }
  0x27   :  { %214 = vmatpush.bf16.msra.mxu0 %v380_v40  ;;  %459 = vmatpush.bf16.msra.mxu2 %v380_v40 }
  0x28   :  { %243 = vmatpush.bf16.msra.mxu1 %v384_v41  ;;  %467 = vmatpush.bf16.msra.mxu3 %v384_v41 }
  0x2b   :  { %215 = vmatpush.bf16.msra.mxu0 %v372_v46  ;;  %460 = vmatpush.bf16.msra.mxu2 %v372_v46 }
  0x2c   :  { %244 = vmatpush.bf16.msra.mxu1 %v376_v47  ;;  %468 = vmatpush.bf16.msra.mxu3 %v376_v47 }
  0x2e   :  { %216 = vmatmul.bf16.vlgmr.msra.gmra.mxu0 %v433_v48  ;;  %226 = vmatmul.bf16.vlgmr.msra.gmra.mxu2 %v435_v49 }
  0x2f   :  { %245 = vmatmul.bf16.vlgmr.msra.gmra.mxu1 %v433_v48  ;;  %255 = vmatmul.bf16.vlgmr.msra.gmra.mxu3 %v435_v49 }
  0x3e   :  { %221 = vmatmul.bf16.gmra.mxu0 %v434_v50  ;;  %231 = vmatmul.bf16.gmra.mxu2 %v436_v51 }
  0x3f   :  { %250 = vmatmul.bf16.gmra.mxu1 %v434_v50  ;;  %260 = vmatmul.bf16.gmra.mxu3 %v436_v51 }
  0xab   :  { %v217_v52 = vpop.f32.mrf.mxu0 }
  0xac   :  { %317 = vst [vmem:[#allocation8] sm:$0xff] %v217_v52  ;;  %v246_v53 = vpop.f32.mrf.mxu1 }
  0xad   :  { %318 = vst [vmem:[#allocation8 + $0x8] sm:$0xff] %v246_v53 }
  0xb1   :  { %v227_v54 = vpop.f32.mrf.mxu2 }
  0xb2   :  { %325 = vst [vmem:[#allocation8 + $0x40] sm:$0xff] %v227_v54  ;;  %v256_v55 = vpop.f32.mrf.mxu3 }
  0xb3   :  { %326 = vst [vmem:[#allocation8 + $0x48] sm:$0xff] %v256_v55  ;;  %v219_v56 = vpop.f32.mrf.mxu0 }
  0xb4   :  { %319 = vst [vmem:[#allocation8 + $0x10] sm:$0xff] %v219_v56  ;;  %v248_v57 = vpop.f32.mrf.mxu1 }
  0xb5   :  { %320 = vst [vmem:[#allocation8 + $0x18] sm:$0xff] %v248_v57 }
  0xb9   :  { %v229_v58 = vpop.f32.mrf.mxu2 }
  0xba   :  { %327 = vst [vmem:[#allocation8 + $0x50] sm:$0xff] %v229_v58  ;;  %v258_v59 = vpop.f32.mrf.mxu3 }
  0xbb   :  { %328 = vst [vmem:[#allocation8 + $0x58] sm:$0xff] %v258_v59  ;;  %v222_v60 = vpop.f32.mrf.mxu0 }
  0xbc   :  { %321 = vst [vmem:[#allocation8 + $0x20] sm:$0xff] %v222_v60  ;;  %v251_v61 = vpop.f32.mrf.mxu1 }
  0xbd   :  { %322 = vst [vmem:[#allocation8 + $0x28] sm:$0xff] %v251_v61 }
  0xc1   :  { %v232_v62 = vpop.f32.mrf.mxu2 }
  0xc2   :  { %329 = vst [vmem:[#allocation8 + $0x60] sm:$0xff] %v232_v62  ;;  %v261_v63 = vpop.f32.mrf.mxu3 }
  0xc3   :  { %330 = vst [vmem:[#allocation8 + $0x68] sm:$0xff] %v261_v63  ;;  %v224_v0 = vpop.f32.mrf.mxu0 }
  0xc4   :  { %323 = vst [vmem:[#allocation8 + $0x30] sm:$0xff] %v224_v0  ;;  %v253_v1 = vpop.f32.mrf.mxu1 }
  0xc5   :  { %324 = vst [vmem:[#allocation8 + $0x38] sm:$0xff] %v253_v1 }
  0xc9   :  { %v234_v2 = vpop.f32.mrf.mxu2 }
  0xca   :  { %331 = vst [vmem:[#allocation8 + $0x70] sm:$0xff] %v234_v2  ;;  %v263_v3 = vpop.f32.mrf.mxu3 }
  0xcb   :  { %332 = vst [vmem:[#allocation8 + $0x78] sm:$0xff] %v263_v3 }
  0xcc   :  { %345 = dma.vmem_to_hbm [thread:$0]  %s338_s1, 2048, %s340_s25, [#allocation5], %s563_s26, %s563_s26, %s564_s27  }
  0xcd   :  { %554 = dma.done.wait [#allocation5], 2048  }
  0xce   :  { %555 = vsyncadd [#allocation5], 4294965248 }
  0xcf   :  { %350 = vsyncpa [#allocation4], 1 }
  0xd0   :  { %351 = vsyncpa [#allocation7], 1 }
  0xd1   :  { %352 = vsyncpa [#allocation5], 1 }

</bundles_post_ra>
